<compile_context>
chip_gen: v5e
topology: v5e:2x2
jax: 0.10.0
libtpu: 0.0.40
codegen_flags: <defaults>
</compile_context>

<pallas_src>
import functools

import jax
import jax.numpy as jnp
from jax import lax
from jax.experimental import pallas as pl
from jax.experimental.pallas import tpu as pltpu


def mlp_softmax_kernel(x_ref, w1_ref, b1_ref, w2_ref, b2_ref, o_ref, *, two_class):
    # x_ref: (tb, n_features) -- natural layout.  The transpose to a
    # lane-dense (hidden, tb) activation happens inside the MXU contraction
    # (both operands contract on their last axis), not as a separate HBM pass.
    hT = lax.dot_general(
        w1_ref[...], x_ref[...],
        dimension_numbers=(((1,), (1,)), ((), ())),
        preferred_element_type=jnp.float32,
    ) + b1_ref[...]                                      # (hidden, tb)
    hT = jnp.maximum(hT, 0.0)

    # logits^T = W2 @ h^T + b2  -> (n_outputs, tb), batch stays on lanes.
    logitsT = jnp.dot(w2_ref[...], hT,
                      preferred_element_type=jnp.float32) + b2_ref[...]

    if two_class:
        # 2-class softmax == sigmoid of the logit difference: one EUP exp,
        # exact division, no cross-sublane reduction, no concat.  Rows sum
        # to 1 exactly up to rounding (fixes the approx-reciprocal drift).
        l0 = logitsT[0:1, :]
        l1 = logitsT[1:2, :]
        p1 = 1.0 / (1.0 + jnp.exp(l0 - l1))
        o_ref[0:1, :] = (1.0 - p1).astype(o_ref.dtype)
        o_ref[1:2, :] = p1.astype(o_ref.dtype)
    else:
        # Generic softmax over the class (sublane) axis, exact normalization.
        m = jnp.max(logitsT, axis=0, keepdims=True)
        e = jnp.exp(logitsT - m)
        o_ref[...] = (e / jnp.sum(e, axis=0, keepdims=True)).astype(o_ref.dtype)


def net_forward(x, w1, b1, w2, b2, *, block_b=16 * 1024, transpose_output=True):
    """Forward pass of `net`.

    x : (B, n_features) float32 (natural PyTorch layout, no wrapper transpose)
    w1: (hidden, n_features), b1: (hidden,)   -- torch nn.Linear layout
    w2: (n_outputs, hidden),  b2: (n_outputs,)
    Returns softmax probabilities, (B, n_outputs) by default; pass
    transpose_output=False to get the kernel-native lane-dense (n_outputs, B)
    and skip the final (tiny) XLA transpose.
    """
    B, n_features = x.shape
    hidden = w1.shape[0]
    n_outputs = w2.shape[0]

    # ---- batch tile selection -------------------------------------------
    # An x block is (tb, n_features); in VMEM its lane axis (n_features) is
    # padded to 128 lanes -> ~512 B per batch column.  Budget ~1.2 KiB/col
    # (double-buffered x + out + f32 intermediates): 16K columns ~= 20 MiB,
    # safely inside the 32 MiB scoped VMEM on v5e/v6e/v7x, while each grid
    # step carries >~2 us of MXU work to amortize the ~0.35 us step overhead.
    block_b = max(128, min(int(block_b), 16 * 1024))
    block_b -= block_b % 128

    if B <= 128:
        tb = B                                   # single full tile
    else:
        # Keep >=2 grid steps so the "parallel" batch axis can use both
        # TensorCores on v7x (no-op on v5e/v6e), capped by the VMEM budget.
        half = pl.cdiv(pl.cdiv(B, 2), 128) * 128
        tb = min(block_b, half)

    grid = (pl.cdiv(B, tb),)                     # ragged tail -> partial block

    b1c = b1.reshape(hidden, 1)
    b2c = b2.reshape(n_outputs, 1)

    kernel = functools.partial(mlp_softmax_kernel, two_class=(n_outputs == 2))

    outT = pl.pallas_call(
        kernel,
        out_shape=jax.ShapeDtypeStruct((n_outputs, B), jnp.float32),
        grid=grid,
        in_specs=[
            # Batch tiles in natural layout: pipelined along the grid.  The
            # ragged last block is handled by Pallas (masked writeback), so
            # there is no explicit transpose or jnp.pad HBM pass.
            pl.BlockSpec((tb, n_features), lambda i: (i, 0)),
            # Weights / biases: constant index_map -> DMA'd once, VMEM-resident.
            pl.BlockSpec((hidden, n_features), lambda i: (0, 0)),
            pl.BlockSpec((hidden, 1), lambda i: (0, 0)),
            pl.BlockSpec((n_outputs, hidden), lambda i: (0, 0)),
            pl.BlockSpec((n_outputs, 1), lambda i: (0, 0)),
        ],
        # Lane-dense output: classes on sublanes, batch on the 128-lane axis.
        out_specs=pl.BlockSpec((n_outputs, tb), lambda i: (0, i)),
        compiler_params=pltpu.CompilerParams(
            dimension_semantics=("parallel",),   # shards batch tiles across TCs on v7x
            vmem_limit_bytes=32 * 1024 * 1024,   # safe on v5e/v6e/v7x for tb <= 16K
        ),
    )(x, w1, b1c, w2, b2c)

    if transpose_output:
        return outT.T      # tiny (n_outputs, B) -> (B, n_outputs) to match torch
    return outT


def init_params(key, n_features, n_outputs, hidden=8):
    """Deterministic init mimicking nn.Linear's U(-1/sqrt(fan_in), 1/sqrt(fan_in)).

    Weights/biases are stored in torch layout: weight (out, in), bias (out,).
    """
    k1, k2, k3, k4 = jax.random.split(key, 4)
    bound1 = 1.0 / jnp.sqrt(n_features)
    bound2 = 1.0 / jnp.sqrt(hidden)
    w1 = jax.random.uniform(k1, (hidden, n_features), jnp.float32, -bound1, bound1)
    b1 = jax.random.uniform(k2, (hidden,), jnp.float32, -bound1, bound1)
    w2 = jax.random.uniform(k3, (n_outputs, hidden), jnp.float32, -bound2, bound2)
    b2 = jax.random.uniform(k4, (n_outputs,), jnp.float32, -bound2, bound2)
    return w1, b1, w2, b2


def _reference(x, w1, b1, w2, b2):
    h = jnp.maximum(x @ w1.T + b1, 0.0)
    return jax.nn.softmax(h @ w2.T + b2, axis=-1)


if __name__ == "__main__":
    key = jax.random.PRNGKey(0)
    n_features, n_outputs = 4, 2
    kx1, kx2, kp = jax.random.split(key, 3)
    w1, b1, w2, b2 = init_params(kp, n_features, n_outputs)

    # --- small (toy) batch: single-tile grid -------------------------------
    x_small = jax.random.normal(kx1, (8, n_features), jnp.float32)
    out_small = jax.block_until_ready(net_forward(x_small, w1, b1, w2, b2))
    ref_small = _reference(x_small, w1, b1, w2, b2)
    assert out_small.shape == (8, n_outputs)
    assert jnp.allclose(out_small, ref_small, atol=1e-3, rtol=1e-3)
    assert jnp.allclose(jnp.sum(out_small, axis=-1), 1.0, atol=1e-3)

    # --- larger batch: >=2 grid steps + ragged trailing block --------------
    x_big = jax.random.normal(kx2, (300, n_features), jnp.float32)
    out_big = jax.block_until_ready(net_forward(x_big, w1, b1, w2, b2))
    ref_big = _reference(x_big, w1, b1, w2, b2)
    assert out_big.shape == (300, n_outputs)
    assert jnp.allclose(out_big, ref_big, atol=1e-3, rtol=1e-3)
    assert jnp.allclose(jnp.sum(out_big, axis=-1), 1.0, atol=1e-3)

    print("KERNEL_OK")
</pallas_src>

<mosaic_0001>
module attributes {stable_mosaic.version = 11 : i64} {
  func.func @mlp_softmax_kernel(%arg0: i32, %arg1: memref<8x4xf32, #tpu.memory_space<vmem>>, %arg2: memref<8x4xf32, #tpu.memory_space<vmem>>, %arg3: memref<8x1xf32, #tpu.memory_space<vmem>>, %arg4: memref<2x8xf32, #tpu.memory_space<vmem>>, %arg5: memref<2x1xf32, #tpu.memory_space<vmem>>, %arg6: memref<2x8xf32, #tpu.memory_space<vmem>>) attributes {dimension_semantics = [#tpu.dimension_semantics<parallel>], iteration_bounds = array<i64: 1>, scalar_prefetch = 0 : i64, scratch_operands = 0 : i64, tpu.core_type = #tpu.core_type<tc>, window_params = [{transform_indices = @transform_0, window_bounds = array<i64: 8, 4>}, {pipeline_mode = #tpu.pipeline_mode<synchronous>, transform_indices = @transform_1, window_bounds = array<i64: 8, 4>}, {pipeline_mode = #tpu.pipeline_mode<synchronous>, transform_indices = @transform_2, window_bounds = array<i64: 8, 1>}, {pipeline_mode = #tpu.pipeline_mode<synchronous>, transform_indices = @transform_3, window_bounds = array<i64: 2, 8>}, {pipeline_mode = #tpu.pipeline_mode<synchronous>, transform_indices = @transform_4, window_bounds = array<i64: 2, 1>}, {transform_indices = @transform_5, window_bounds = array<i64: 2, 8>}]} {
    %c0 = arith.constant 0 : index
    %c0_0 = arith.constant 0 : index
    %0 = vector.load %arg2[%c0, %c0_0] : memref<8x4xf32, #tpu.memory_space<vmem>>, vector<8x4xf32>
    %c0_1 = arith.constant 0 : index
    %c0_2 = arith.constant 0 : index
    %1 = vector.load %arg1[%c0_1, %c0_2] : memref<8x4xf32, #tpu.memory_space<vmem>>, vector<8x4xf32>
    %cst = arith.constant dense<0.000000e+00> : vector<8x8xf32>
    %2 = tpu.matmul %0, %1, %cst {dimension_numbers = #tpu.dot_dimension_numbers<[1], [1], [0], [0], [0, 0, 1, 0], [], []>} : vector<8x4xf32>, vector<8x4xf32>, vector<8x8xf32> -> vector<8x8xf32>
    %c0_3 = arith.constant 0 : index
    %c0_4 = arith.constant 0 : index
    %3 = vector.load %arg3[%c0_3, %c0_4] : memref<8x1xf32, #tpu.memory_space<vmem>>, vector<8x1xf32>
    %4 = vector.broadcast %3 : vector<8x1xf32> to vector<8x8xf32>
    %5 = arith.addf %2, %4 : vector<8x8xf32>
    %cst_5 = arith.constant 0.000000e+00 : f32
    %6 = vector.broadcast %cst_5 : f32 to vector<8x8xf32>
    %7 = arith.maximumf %5, %6 : vector<8x8xf32>
    %c0_6 = arith.constant 0 : index
    %c0_7 = arith.constant 0 : index
    %8 = vector.load %arg4[%c0_6, %c0_7] : memref<2x8xf32, #tpu.memory_space<vmem>>, vector<2x8xf32>
    %cst_8 = arith.constant dense<0.000000e+00> : vector<2x8xf32>
    %9 = tpu.matmul %8, %7, %cst_8 {dimension_numbers = #tpu.dot_dimension_numbers<[1], [0], [0], [1], [0, 0, 1, 1], [], []>} : vector<2x8xf32>, vector<8x8xf32>, vector<2x8xf32> -> vector<2x8xf32>
    %c0_9 = arith.constant 0 : index
    %c0_10 = arith.constant 0 : index
    %10 = vector.load %arg5[%c0_9, %c0_10] : memref<2x1xf32, #tpu.memory_space<vmem>>, vector<2x1xf32>
    %11 = vector.broadcast %10 : vector<2x1xf32> to vector<2x8xf32>
    %12 = arith.addf %9, %11 : vector<2x8xf32>
    %13 = vector.extract_strided_slice %12 {offsets = [0, 0], sizes = [1, 8], strides = [1, 1]} : vector<2x8xf32> to vector<1x8xf32>
    %14 = vector.extract_strided_slice %12 {offsets = [1, 0], sizes = [1, 8], strides = [1, 1]} : vector<2x8xf32> to vector<1x8xf32>
    %15 = arith.subf %13, %14 : vector<1x8xf32>
    %16 = math.exp %15 : vector<1x8xf32>
    %cst_11 = arith.constant 1.000000e+00 : f32
    %17 = vector.broadcast %cst_11 : f32 to vector<1x8xf32>
    %18 = arith.addf %17, %16 : vector<1x8xf32>
    %cst_12 = arith.constant 1.000000e+00 : f32
    %19 = vector.broadcast %cst_12 : f32 to vector<1x8xf32>
    %20 = arith.divf %19, %18 : vector<1x8xf32>
    %cst_13 = arith.constant 1.000000e+00 : f32
    %21 = vector.broadcast %cst_13 : f32 to vector<1x8xf32>
    %22 = arith.subf %21, %20 : vector<1x8xf32>
    %c0_14 = arith.constant 0 : index
    %c0_15 = arith.constant 0 : index
    %23 = vector.load %arg6[%c0_14, %c0_15] : memref<2x8xf32, #tpu.memory_space<vmem>>, vector<1x8xf32>
    tpu.vector_store %arg6[%c0_14, %c0_15], %22 {strides = array<i32>} : memref<2x8xf32, #tpu.memory_space<vmem>>, vector<1x8xf32>,
    %c1 = arith.constant 1 : index
    %c0_16 = arith.constant 0 : index
    %24 = vector.load %arg6[%c1, %c0_16] : memref<2x8xf32, #tpu.memory_space<vmem>>, vector<1x8xf32>
    tpu.vector_store %arg6[%c1, %c0_16], %20 {strides = array<i32>} : memref<2x8xf32, #tpu.memory_space<vmem>>, vector<1x8xf32>,
    return
  }
  func.func @transform_0(%arg0: i32) -> (i32, i32) {
    %c0_i32 = arith.constant 0 : i32
    %c0_i32_0 = arith.constant 0 : i32
    return %arg0, %c0_i32 : i32, i32
  }
  func.func @transform_1(%arg0: i32) -> (i32, i32) {
    %c0_i32 = arith.constant 0 : i32
    %c0_i32_0 = arith.constant 0 : i32
    %c0_i32_1 = arith.constant 0 : i32
    return %c0_i32, %c0_i32_0 : i32, i32
  }
  func.func @transform_2(%arg0: i32) -> (i32, i32) {
    %c0_i32 = arith.constant 0 : i32
    %c0_i32_0 = arith.constant 0 : i32
    %c0_i32_1 = arith.constant 0 : i32
    return %c0_i32, %c0_i32_0 : i32, i32
  }
  func.func @transform_3(%arg0: i32) -> (i32, i32) {
    %c0_i32 = arith.constant 0 : i32
    %c0_i32_0 = arith.constant 0 : i32
    %c0_i32_1 = arith.constant 0 : i32
    return %c0_i32, %c0_i32_0 : i32, i32
  }
  func.func @transform_4(%arg0: i32) -> (i32, i32) {
    %c0_i32 = arith.constant 0 : i32
    %c0_i32_0 = arith.constant 0 : i32
    %c0_i32_1 = arith.constant 0 : i32
    return %c0_i32, %c0_i32_0 : i32, i32
  }
  func.func @transform_5(%arg0: i32) -> (i32, i32) {
    %c0_i32 = arith.constant 0 : i32
    %c0_i32_0 = arith.constant 0 : i32
    return %c0_i32, %arg0 : i32, i32
  }
}

</mosaic_0001>

<bundles_post_ra>
// kernel: tpu_custom_call.1
= control target key start
LH: loop header
LB: loop body
LE: loop exit
PB: predicated region body
PF: predicated region fallthrough
CT: control target
= control target key end

     0   :  { %vm29_vm0 = vcmask 31744   ;;  %v166_v3 = vmov 0   ;;  %s216_s0 = inlined_call_operand.vmem [shape: f32[8,4], index: 0, kind: input, shape index: {}]   ;;  %s217_s1 = inlined_call_operand.vmem [shape: f32[8,4], index: 1, kind: input, shape index: {}]   ;;  %s218_s2 = inlined_call_operand.vmem [shape: f32[8,1], index: 2, kind: input, shape index: {}]   ;;  %s219_s3 = inlined_call_operand.vmem [shape: f32[2,8], index: 3, kind: input, shape index: {}]   ;;  %s220_s4 = inlined_call_operand.vmem [shape: f32[2,1], index: 4, kind: input, shape index: {}]   ;;  %s221_s5 = inlined_call_operand.hbm [shape: f32[2,8], index: 5, kind: output, shape index: {}]  }
   0x1   :  { %v22_v0 = vld [vmem:[%s216_s0] sm:$0xff]  ;;  %135 = vset.pattern.permute.xlu0 %v166_v3 }
   0x2   :  { %v23_v1 = vld [vmem:[%s218_s2] sm:$0xff]  ;;  %130 = vmatpush.xpose.msk.msra.mxu0 %vm29_vm0, %v22_v0 }
   0x3   :  { %v21_v2 = vld [vmem:[%s217_s1] sm:$0xff] }
   0x4   :  { %10 = vsyncpa [#allocation3], 0  ;;  %26 = vperm.xlu0 %135, %v23_v1   ;;  %v58_v4 = vld [vmem:[%s220_s4] sm:$0x3]  ;;  %vm64_vm1 = vcmask 64512   ;;  %vm111_vm5 = vcmask 57344  }
   0x5   :  { %131 = vmatmul.msk.f32.vlgmr.msra.gmra.mxu0 %vm29_vm0, %v21_v2  ;;  %v57_v9 = vld [vmem:[%s219_s3] sm:$0x3]  ;;  %s167_s1 = smov [#allocation2]   ;;  %s121_s27 = sshll.u32 %s221_s5, 4  ;;  %s122_s27 = int_to_ptr.hbm [resolvable:$true] %s121_s27 }
   0x6   :  { %s119_s3 = sshll.u32 %s167_s1, 4  ;;  %s120_s3 = int_to_ptr.vmem [resolvable:$true] %s119_s3 }
   0xc   :  { %61 = vperm.xlu0 %135, %v58_v4  }
  0x76   :  { %v27_v5 = vpop.permute.xlu0 %26 }
  0x7e   :  { %v62_v10 = vpop.permute.xlu0 %61 }
  0x82   :  { %v53_v6 = vpop.f32.mrf.mxu0 }
  0x83   :  { %v54_v7 = vadd.f32 %v53_v6, %v27_v5 }
  0x85   :  { %v56_v8 = vmax.f32 %v54_v7, 0.0 }
  0x87   :  { %83 = vmatpush.msra.mxu1 %v56_v8 }
  0x88   :  { %132 = vmatmul.msk.f32.vlgmr.msra.gmra.mxu1 %vm64_vm1, %v57_v9 }
 0x105   :  { %v85_v11 = vpop.f32.mrf.mxu1 }
 0x106   :  { %v86_v12 = vadd.f32 %v85_v11, %v62_v10 }
 0x108   :  { %v89_v13 = vrot.slane %v86_v12, 1 }
 0x10a   :  { %v91_v14 = vsub.f32 %v86_v12, %v89_v13 }
 0x10c   :  { %v92_v15 = vmul.f32 1.442695, %v91_v14 }
 0x10e   :  { %136 = vpow2.f32 %v92_v15 }
 0x114   :  { %v137_v16 = vpop.eup %136 }
 0x115   :  { %v94_v17 = vadd.f32 1.0, %v137_v16 }
 0x117   :  { %138 = vrcp.f32 %v94_v17  ;;  %v106_v21 = vand.u32 2147483648, %v94_v17  ;;  %v104_v23 = vand.u32 2147483647, %v94_v17  ;;  %vm100_vm3 = vweird.f32 %v94_v17 }
 0x119   :  { %v107_v25 = vor.u32 1.1754944e-38, %v106_v21  ;;  %vm105_vm6 = vcmp.eq.f32.partialorder %v104_v23, 8.507059e+37 }
 0x11d   :  { %v139_v18 = vpop.eup %138 }
 0x11e   :  { %v96_v19 = vmul.f32 %v139_v18, %v94_v17  ;;  %vm101_vm2 = vweird.f32 %v139_v18 }
 0x11f   :  { %vm102_vm4 = vmor %vm100_vm3, %vm101_vm2 }
 0x120   :  { %v97_v20 = vsub.f32 1.0, %v96_v19 }
 0x122   :  { %v98_v22 = vmul.f32 %v139_v18, %v97_v20 }
 0x124   :  { %v99_v24 = vadd.f32 %v139_v18, %v98_v22 }
 0x126   :  { %v103_v26 = vsel %vm102_vm4, %v139_v18, %v99_v24 }
 0x127   :  { %v108_v27 = vsel %vm105_vm6, %v107_v25, %v103_v26 }
 0x128   :  { %v110_v28 = vsub.f32 1.0, %v108_v27  ;;  %113 = vst.msk [vmem:[#allocation2 + $0x1] sm:$0x1] %vm111_vm5, %v108_v27 }
 0x12a   :  { %112 = vst.msk [vmem:[#allocation2] sm:$0x1] %vm111_vm5, %v110_v28 }
 0x12b   :  { %124 = dma.vmem_to_hbm [thread:$0]  %s120_s3, 32, %s122_s27, [#allocation3]  }
 0x12c   :  { %164 = dma.done.wait [#allocation3], 32  }
 0x12d   :  { %165 = vsyncadd [#allocation3], 4294967264 }
 0x12e   :  { %129 = vsyncpa [#allocation3], 1 }

</bundles_post_ra>
